<compile_context>
chip_gen: v6e
topology: v6e:2x2x1
jax: 0.10.0
libtpu: 0.0.40
codegen_flags: <defaults>
</compile_context>

<pallas_src>
import math
import jax
import jax.numpy as jnp
from jax import lax
from jax.experimental import pallas as pl
from jax.experimental.pallas import tpu as pltpu


_SQRT_HALF = 1.0 / math.sqrt(2.0)


def _gelu_exact(x):
    # PyTorch nn.GELU() default (approximate='none'): exact erf-based GELU.
    return 0.5 * x * (1.0 + lax.erf(x * _SQRT_HALF))


def _round_up(x, m):
    return ((x + m - 1) // m) * m


def _tpu_vmem_capacity():
    try:
        info = pltpu.get_tpu_info()
        cap = getattr(info, "vmem_capacity_bytes", None)
        if cap:
            return int(cap)
    except Exception:
        pass
    return 64 * 1024 * 1024  # conservative (v7x-sized) fallback


def _vmem_estimate(tm, tf, d_model, d_ff, x_it, o_it, w_it):
    wbuf = 1 if tf >= d_ff else 2            # resident weights are fetched once
    return int(2 * tm * d_model * x_it       # x tile (double buffered)
               + wbuf * d_model * tf * w_it  # w1 chunk
               + wbuf * tf * d_model * w_it  # w2 chunk
               + wbuf * tf * 4               # b1 chunk (f32)
               + 2 * tm * d_model * o_it     # out tile (double buffered)
               + tm * d_model * 4            # f32 accumulator scratch
               + tm * tf * (4 + w_it)        # f32 GELU intermediate + cast copy
               + 6 * d_model * 4)            # b2 / gamma / beta


def ffn_kernel(x_ref, w1_ref, b1_ref, w2_ref, b2_ref, g_ref, beta_ref,
               o_ref, acc_ref):
    k = pl.program_id(1)

    x_in = x_ref[...]                                   # native activation dtype

    # First linear chunk on the MXU in the weight dtype (bf16 native path when
    # weights are bf16); accumulate in f32, then exact erf GELU in f32.
    h = jnp.dot(x_in.astype(w1_ref.dtype), w1_ref[...],
                preferred_element_type=jnp.float32)
    h = _gelu_exact(h + b1_ref[...])

    # TODO(synk): dropout is identity in eval mode; training-mode dropout would
    # use pltpu.prng_seed + pltpu.stateful_bernoulli.

    # Second linear chunk (weight dtype on the MXU, f32 accumulation).
    partial = jnp.dot(h.astype(w2_ref.dtype), w2_ref[...],
                      preferred_element_type=jnp.float32)

    @pl.when(k == 0)
    def _init():
        acc_ref[...] = partial

    @pl.when(k > 0)
    def _acc():
        acc_ref[...] += partial

    @pl.when(k == pl.num_programs(1) - 1)
    def _finalize():
        # residual + LayerNorm (eps = 1e-5, population variance), all in f32.
        y = acc_ref[...] + b2_ref[...] + x_in.astype(jnp.float32)
        mean = jnp.mean(y, axis=-1, keepdims=True)
        cen = y - mean
        var = jnp.mean(cen * cen, axis=-1, keepdims=True)
        y_norm = cen * lax.rsqrt(var + 1e-5)
        out = y_norm * g_ref[...] + beta_ref[...]
        o_ref[...] = out.astype(o_ref.dtype)


def positionwise_ffn(x, w1, b1, w2, b2, gamma, beta, *,
                     weight_dtype=jnp.bfloat16,
                     tile_m=None, tile_ff=None, vmem_limit_bytes=None):
    """x: (B, S, d_model) -> (B, S, d_model).

    Weights are cast to `weight_dtype` (bf16 by default -> native MXU path and
    half the HBM weight stream). Pass weight_dtype=jnp.float32 to keep f32.
    """
    B, S, d_model = x.shape
    d_ff = w1.shape[1]
    N = B * S

    # Canonical compute dtype for the big weight matrices.
    if weight_dtype is not None and w1.dtype != weight_dtype:
        w1 = w1.astype(weight_dtype)
        w2 = w2.astype(weight_dtype)
    w_it = jnp.dtype(w1.dtype).itemsize
    x_it = jnp.dtype(x.dtype).itemsize
    o_it = x_it

    # ---- per-generation VMEM / tiling defaults -------------------------------
    vmem_cap = _tpu_vmem_capacity()
    small_vmem = vmem_cap <= 80 * 1024 * 1024            # v7x: 64 MiB per TC
    cap_limit = (48 if small_vmem else 100) * 1024 * 1024
    weight_budget = (20 if small_vmem else 40) * 1024 * 1024

    if tile_m is None:
        tile_m = 512 if small_vmem else 1024
    if tile_ff is None:
        if 2 * d_model * d_ff * w_it <= weight_budget:
            tile_ff = d_ff                                # weights-resident path
        else:
            tile_ff = 1024
    tile_ff = min(tile_ff, d_ff)

    # Shrink tiles until the estimated working set fits the per-gen budget.
    budget = int(0.85 * cap_limit)
    while (_vmem_estimate(tile_m, tile_ff, d_model, d_ff, x_it, o_it, w_it)
           > budget and (tile_m > 128 or tile_ff > 256)):
        if tile_m > 128:
            tile_m = max(128, tile_m // 2)
        else:
            tile_ff = max(256, _round_up(tile_ff // 2, 128))

    # ---- d_ff (reduction) tiling ---------------------------------------------
    if tile_ff >= d_ff:
        tile_ff = d_ff                                    # full-dim block: fetched once
        ff_pad = d_ff
        w1p, b1p, w2p = w1, b1, w2
    else:
        tile_ff = max(128, _round_up(tile_ff, 128))
        ff_pad = _round_up(d_ff, tile_ff)
        pad = ff_pad - d_ff
        if pad:
            # Zero-padded d_ff columns give GELU(b1=0 pad)=GELU(0)=0 and hit zero
            # rows of w2 -> exact no-op.
            w1p = jnp.pad(w1, ((0, 0), (0, pad)))
            b1p = jnp.pad(b1, ((0, pad),))
            w2p = jnp.pad(w2, ((0, pad), (0, 0)))
        else:
            w1p, b1p, w2p = w1, b1, w2

    # ---- row (token) tiling ---------------------------------------------------
    # Keep >=2 row tiles when possible (v7x megacore: both TCs get work on the
    # "parallel" axis), and prefer a tile_m dividing N so x needs no pad copy.
    tile_m = _round_up(min(tile_m, max(8, _round_up((N + 1) // 2, 8))), 8)
    n_pad = _round_up(N, tile_m)
    t = tile_m
    while t >= 8 and N % t != 0:
        t -= 8
    if t >= 8 and N % t == 0 and 2 * t >= tile_m:
        tile_m, n_pad = t, N

    x2d = x.reshape(N, d_model)
    if n_pad != N:
        x2d = jnp.pad(x2d, ((0, n_pad - N), (0, 0)))

    b1_2d = b1p.reshape(1, ff_pad).astype(jnp.float32)
    b2_2d = b2.reshape(1, d_model).astype(jnp.float32)
    g_2d = gamma.reshape(1, d_model).astype(jnp.float32)
    beta_2d = beta.reshape(1, d_model).astype(jnp.float32)

    grid = (n_pad // tile_m, ff_pad // tile_ff)
    n_k = grid[1]

    if vmem_limit_bytes is None:
        est = _vmem_estimate(tile_m, tile_ff, d_model, d_ff, x_it, o_it, w_it)
        vmem_limit_bytes = int(min(cap_limit,
                                   max(int(1.5 * est), 32 * 1024 * 1024)))

    # Advisory cost estimate: two matmuls + erf over the (N, d_ff) intermediate.
    w_fetches = 1 if n_k == 1 else grid[0]
    cost = pl.CostEstimate(
        flops=int(4 * N * d_model * d_ff + 10 * N * d_model),
        transcendentals=int(N * d_ff),
        bytes_accessed=int(N * d_model * (x_it + o_it)
                           + w_fetches * 2 * d_model * ff_pad * w_it
                           + w_fetches * ff_pad * 4 + 3 * d_model * 4))

    out = pl.pallas_call(
        ffn_kernel,
        out_shape=jax.ShapeDtypeStruct((n_pad, d_model), x.dtype),
        grid_spec=pltpu.PrefetchScalarGridSpec(
            num_scalar_prefetch=0,
            grid=grid,
            in_specs=[
                pl.BlockSpec((tile_m, d_model), lambda i, k: (i, 0)),   # x rows
                pl.BlockSpec((d_model, tile_ff), lambda i, k: (0, k)),  # w1 chunk
                pl.BlockSpec((1, tile_ff), lambda i, k: (0, k)),        # b1 chunk
                pl.BlockSpec((tile_ff, d_model), lambda i, k: (k, 0)),  # w2 chunk
                pl.BlockSpec((1, d_model), lambda i, k: (0, 0)),        # b2
                pl.BlockSpec((1, d_model), lambda i, k: (0, 0)),        # gamma
                pl.BlockSpec((1, d_model), lambda i, k: (0, 0)),        # beta
            ],
            out_specs=pl.BlockSpec((tile_m, d_model), lambda i, k: (i, 0)),
            scratch_shapes=[pltpu.VMEM((tile_m, d_model), jnp.float32)],
        ),
        compiler_params=pltpu.CompilerParams(
            dimension_semantics=("parallel", "arbitrary"),
            vmem_limit_bytes=vmem_limit_bytes),
        cost_estimate=cost,
    )(x2d, w1p, b1_2d, w2p, b2_2d, g_2d, beta_2d)

    return out[:N].reshape(B, S, d_model)


def reference_ffn(x, w1, b1, w2, b2, gamma, beta):
    h = jnp.dot(x, w1) + b1
    h = 0.5 * h * (1.0 + lax.erf(h / jnp.sqrt(2.0)))
    y = jnp.dot(h, w2) + b2
    y = y + x
    mean = jnp.mean(y, axis=-1, keepdims=True)
    var = jnp.var(y, axis=-1, keepdims=True)
    y = (y - mean) / jnp.sqrt(var + 1e-5)
    return y * gamma + beta


def _make_params(key, d_model, d_ff):
    k1, k2, k3, k4 = jax.random.split(key, 4)
    # nn.Linear init ranges; weights stored in the transposed (in, out) layout.
    lim1 = 1.0 / math.sqrt(d_model)
    lim2 = 1.0 / math.sqrt(d_ff)
    w1 = jax.random.uniform(k1, (d_model, d_ff), jnp.float32, -lim1, lim1)
    b1 = jax.random.uniform(k2, (d_ff,), jnp.float32, -lim1, lim1)
    w2 = jax.random.uniform(k3, (d_ff, d_model), jnp.float32, -lim2, lim2)
    b2 = jax.random.uniform(k4, (d_model,), jnp.float32, -lim2, lim2)
    gamma = jnp.ones((d_model,), jnp.float32)
    beta = jnp.zeros((d_model,), jnp.float32)
    return w1, b1, w2, b2, gamma, beta


if __name__ == "__main__":
    key = jax.random.PRNGKey(0)

    # Test 1: small shapes (batch=2, seq=8, d_model=32, d_ff=64), f32 weights
    # -> weights-resident path, 2 row tiles, exact-f32 comparison.
    B, S, d_model, d_ff = 2, 8, 32, 64
    kx, kp = jax.random.split(key)
    x = jax.random.normal(kx, (B, S, d_model), dtype=jnp.float32)
    params = _make_params(kp, d_model, d_ff)

    out = positionwise_ffn(x, *params, weight_dtype=jnp.float32)
    out = jax.block_until_ready(out)
    ref = reference_ffn(x, *params)
    assert out.shape == (B, S, d_model)
    assert jnp.allclose(out, ref, atol=1e-4, rtol=1e-4), "mismatch vs reference (test 1)"

    # Test 2: default bf16 weights, chunked d_ff reduction and row tiling
    # (N=80 -> tile_m snaps to 40 (2 tiles, no pad); d_ff=384 -> 3 chunks of 128).
    B2, S2, d_model2, d_ff2 = 2, 40, 128, 384
    kx2, kp2 = jax.random.split(kp)
    x2 = jax.random.normal(kx2, (B2, S2, d_model2), dtype=jnp.float32)
    params2 = _make_params(kp2, d_model2, d_ff2)

    out2 = positionwise_ffn(x2, *params2, tile_m=64, tile_ff=128)
    out2 = jax.block_until_ready(out2)
    ref2 = reference_ffn(x2, *params2)
    assert out2.shape == (B2, S2, d_model2)
    assert jnp.allclose(out2, ref2, atol=1e-2, rtol=1e-2), "mismatch vs reference (test 2)"

    print("KERNEL_OK")
</pallas_src>

<mosaic_0001>
module attributes {stable_mosaic.version = 11 : i64} {
  func.func @ffn_kernel(%arg0: i32, %arg1: i32, %arg2: memref<8x32xf32, #tpu.memory_space<vmem>>, %arg3: memref<32x64xf32, #tpu.memory_space<vmem>>, %arg4: memref<1x64xf32, #tpu.memory_space<vmem>>, %arg5: memref<64x32xf32, #tpu.memory_space<vmem>>, %arg6: memref<1x32xf32, #tpu.memory_space<vmem>>, %arg7: memref<1x32xf32, #tpu.memory_space<vmem>>, %arg8: memref<1x32xf32, #tpu.memory_space<vmem>>, %arg9: memref<8x32xf32, #tpu.memory_space<vmem>>, %arg10: memref<8x32xf32, #tpu.memory_space<vmem>>) attributes {dimension_semantics = [#tpu.dimension_semantics<parallel>, #tpu.dimension_semantics<arbitrary>], iteration_bounds = array<i64: 2, 1>, scalar_prefetch = 0 : i64, scratch_operands = 1 : i64, tpu.core_type = #tpu.core_type<tc>, window_params = [{transform_indices = @transform_0, window_bounds = array<i64: 8, 32>}, {transform_indices = @transform_1, window_bounds = array<i64: 32, 64>}, {transform_indices = @transform_2, window_bounds = array<i64: 1, 64>}, {transform_indices = @transform_3, window_bounds = array<i64: 64, 32>}, {pipeline_mode = #tpu.pipeline_mode<synchronous>, transform_indices = @transform_4, window_bounds = array<i64: 1, 32>}, {pipeline_mode = #tpu.pipeline_mode<synchronous>, transform_indices = @transform_5, window_bounds = array<i64: 1, 32>}, {pipeline_mode = #tpu.pipeline_mode<synchronous>, transform_indices = @transform_6, window_bounds = array<i64: 1, 32>}, {transform_indices = @transform_7, window_bounds = array<i64: 8, 32>}]} {
    %c0 = arith.constant 0 : index
    %c0_0 = arith.constant 0 : index
    %0 = vector.load %arg2[%c0, %c0_0] : memref<8x32xf32, #tpu.memory_space<vmem>>, vector<8x32xf32>
    %c0_1 = arith.constant 0 : index
    %c0_2 = arith.constant 0 : index
    %1 = vector.load %arg3[%c0_1, %c0_2] : memref<32x64xf32, #tpu.memory_space<vmem>>, vector<32x64xf32>
    %cst = arith.constant dense<0.000000e+00> : vector<8x64xf32>
    %2 = tpu.matmul %0, %1, %cst {dimension_numbers = #tpu.dot_dimension_numbers<[1], [0], [0], [1], [0, 0, 1, 1], [], []>} : vector<8x32xf32>, vector<32x64xf32>, vector<8x64xf32> -> vector<8x64xf32>
    %c0_3 = arith.constant 0 : index
    %c0_4 = arith.constant 0 : index
    %3 = vector.load %arg4[%c0_3, %c0_4] : memref<1x64xf32, #tpu.memory_space<vmem>>, vector<1x64xf32>
    %4 = vector.broadcast %3 : vector<1x64xf32> to vector<8x64xf32>
    %5 = arith.addf %2, %4 : vector<8x64xf32>
    %cst_5 = arith.constant 5.000000e-01 : f32
    %6 = vector.broadcast %cst_5 : f32 to vector<8x64xf32>
    %7 = arith.mulf %6, %5 : vector<8x64xf32>
    %cst_6 = arith.constant 0.707106769 : f32
    %8 = vector.broadcast %cst_6 : f32 to vector<8x64xf32>
    %9 = arith.mulf %5, %8 : vector<8x64xf32>
    %10 = math.erf %9 : vector<8x64xf32>
    %cst_7 = arith.constant 1.000000e+00 : f32
    %11 = vector.broadcast %cst_7 : f32 to vector<8x64xf32>
    %12 = arith.addf %11, %10 : vector<8x64xf32>
    %13 = arith.mulf %7, %12 : vector<8x64xf32>
    %c0_8 = arith.constant 0 : index
    %c0_9 = arith.constant 0 : index
    %14 = vector.load %arg5[%c0_8, %c0_9] : memref<64x32xf32, #tpu.memory_space<vmem>>, vector<64x32xf32>
    %cst_10 = arith.constant dense<0.000000e+00> : vector<8x32xf32>
    %15 = tpu.matmul %13, %14, %cst_10 {dimension_numbers = #tpu.dot_dimension_numbers<[1], [0], [0], [1], [0, 0, 1, 1], [], []>} : vector<8x64xf32>, vector<64x32xf32>, vector<8x32xf32> -> vector<8x32xf32>
    %c0_i32 = arith.constant 0 : i32
    %16 = arith.cmpi eq, %arg1, %c0_i32 : i32
    %17 = arith.extui %16 : i1 to i32
    %c0_i32_11 = arith.constant 0 : i32
    %18 = arith.cmpi ne, %17, %c0_i32_11 : i32
    scf.if %18 {
      %c0_16 = arith.constant 0 : index
      %c0_17 = arith.constant 0 : index
      %25 = vector.load %arg10[%c0_16, %c0_17] : memref<8x32xf32, #tpu.memory_space<vmem>>, vector<8x32xf32>
      tpu.vector_store %arg10[%c0_16, %c0_17], %15 {strides = array<i32>} : memref<8x32xf32, #tpu.memory_space<vmem>>, vector<8x32xf32>,
    } else {
    }
    %c0_i32_12 = arith.constant 0 : i32
    %19 = arith.cmpi sgt, %arg1, %c0_i32_12 : i32
    %20 = arith.extui %19 : i1 to i32
    %c0_i32_13 = arith.constant 0 : i32
    %21 = arith.cmpi ne, %20, %c0_i32_13 : i32
    scf.if %21 {
      %c0_16 = arith.constant 0 : index
      %c0_17 = arith.constant 0 : index
      %25 = vector.load %arg10[%c0_16, %c0_17] : memref<8x32xf32, #tpu.memory_space<vmem>>, vector<8x32xf32>
      %26 = arith.addf %25, %15 : vector<8x32xf32>
      %c0_18 = arith.constant 0 : index
      %c0_19 = arith.constant 0 : index
      %27 = vector.load %arg10[%c0_18, %c0_19] : memref<8x32xf32, #tpu.memory_space<vmem>>, vector<8x32xf32>
      tpu.vector_store %arg10[%c0_18, %c0_19], %26 {strides = array<i32>} : memref<8x32xf32, #tpu.memory_space<vmem>>, vector<8x32xf32>,
    } else {
    }
    %c0_i32_14 = arith.constant 0 : i32
    %22 = arith.cmpi eq, %arg1, %c0_i32_14 : i32
    %23 = arith.extui %22 : i1 to i32
    %c0_i32_15 = arith.constant 0 : i32
    %24 = arith.cmpi ne, %23, %c0_i32_15 : i32
    scf.if %24 {
      %c0_16 = arith.constant 0 : index
      %c0_17 = arith.constant 0 : index
      %25 = vector.load %arg10[%c0_16, %c0_17] : memref<8x32xf32, #tpu.memory_space<vmem>>, vector<8x32xf32>
      %c0_18 = arith.constant 0 : index
      %c0_19 = arith.constant 0 : index
      %26 = vector.load %arg6[%c0_18, %c0_19] : memref<1x32xf32, #tpu.memory_space<vmem>>, vector<1x32xf32>
      %27 = vector.broadcast %26 : vector<1x32xf32> to vector<8x32xf32>
      %28 = arith.addf %25, %27 : vector<8x32xf32>
      %29 = arith.addf %28, %0 : vector<8x32xf32>
      %cst_20 = arith.constant dense<0.000000e+00> : vector<8xf32>
      %30 = vector.multi_reduction <add>, %29, %cst_20 [1] : vector<8x32xf32> to vector<8xf32>
      %31 = vector.shape_cast %30 : vector<8xf32> to vector<8x1xf32>
      %cst_21 = arith.constant 3.200000e+01 : f32
      %32 = vector.broadcast %cst_21 : f32 to vector<8x1xf32>
      %33 = arith.divf %31, %32 : vector<8x1xf32>
      %34 = vector.broadcast %33 : vector<8x1xf32> to vector<8x32xf32>
      %35 = arith.subf %29, %34 : vector<8x32xf32>
      %36 = arith.mulf %35, %35 : vector<8x32xf32>
      %cst_22 = arith.constant dense<0.000000e+00> : vector<8xf32>
      %37 = vector.multi_reduction <add>, %36, %cst_22 [1] : vector<8x32xf32> to vector<8xf32>
      %38 = vector.shape_cast %37 : vector<8xf32> to vector<8x1xf32>
      %cst_23 = arith.constant 3.200000e+01 : f32
      %39 = vector.broadcast %cst_23 : f32 to vector<8x1xf32>
      %40 = arith.divf %38, %39 : vector<8x1xf32>
      %cst_24 = arith.constant 9.99999974E-6 : f32
      %41 = vector.broadcast %cst_24 : f32 to vector<8x1xf32>
      %42 = arith.addf %40, %41 : vector<8x1xf32>
      %43 = math.rsqrt %42 : vector<8x1xf32>
      %44 = vector.broadcast %43 : vector<8x1xf32> to vector<8x32xf32>
      %45 = arith.mulf %35, %44 : vector<8x32xf32>
      %c0_25 = arith.constant 0 : index
      %c0_26 = arith.constant 0 : index
      %46 = vector.load %arg7[%c0_25, %c0_26] : memref<1x32xf32, #tpu.memory_space<vmem>>, vector<1x32xf32>
      %47 = vector.broadcast %46 : vector<1x32xf32> to vector<8x32xf32>
      %48 = arith.mulf %45, %47 : vector<8x32xf32>
      %c0_27 = arith.constant 0 : index
      %c0_28 = arith.constant 0 : index
      %49 = vector.load %arg8[%c0_27, %c0_28] : memref<1x32xf32, #tpu.memory_space<vmem>>, vector<1x32xf32>
      %50 = vector.broadcast %49 : vector<1x32xf32> to vector<8x32xf32>
      %51 = arith.addf %48, %50 : vector<8x32xf32>
      %c0_29 = arith.constant 0 : index
      %c0_30 = arith.constant 0 : index
      %52 = vector.load %arg9[%c0_29, %c0_30] : memref<8x32xf32, #tpu.memory_space<vmem>>, vector<8x32xf32>
      tpu.vector_store %arg9[%c0_29, %c0_30], %51 {strides = array<i32>} : memref<8x32xf32, #tpu.memory_space<vmem>>, vector<8x32xf32>,
    } else {
    }
    return
  }
  func.func @transform_0(%arg0: i32, %arg1: i32) -> (i32, i32) {
    %c0_i32 = arith.constant 0 : i32
    %c0_i32_0 = arith.constant 0 : i32
    return %arg0, %c0_i32 : i32, i32
  }
  func.func @transform_1(%arg0: i32, %arg1: i32) -> (i32, i32) {
    %c0_i32 = arith.constant 0 : i32
    %c0_i32_0 = arith.constant 0 : i32
    return %c0_i32, %arg1 : i32, i32
  }
  func.func @transform_2(%arg0: i32, %arg1: i32) -> (i32, i32) {
    %c0_i32 = arith.constant 0 : i32
    %c0_i32_0 = arith.constant 0 : i32
    return %c0_i32, %arg1 : i32, i32
  }
  func.func @transform_3(%arg0: i32, %arg1: i32) -> (i32, i32) {
    %c0_i32 = arith.constant 0 : i32
    %c0_i32_0 = arith.constant 0 : i32
    return %arg1, %c0_i32 : i32, i32
  }
  func.func @transform_4(%arg0: i32, %arg1: i32) -> (i32, i32) {
    %c0_i32 = arith.constant 0 : i32
    %c0_i32_0 = arith.constant 0 : i32
    %c0_i32_1 = arith.constant 0 : i32
    return %c0_i32, %c0_i32_0 : i32, i32
  }
  func.func @transform_5(%arg0: i32, %arg1: i32) -> (i32, i32) {
    %c0_i32 = arith.constant 0 : i32
    %c0_i32_0 = arith.constant 0 : i32
    %c0_i32_1 = arith.constant 0 : i32
    return %c0_i32, %c0_i32_0 : i32, i32
  }
  func.func @transform_6(%arg0: i32, %arg1: i32) -> (i32, i32) {
    %c0_i32 = arith.constant 0 : i32
    %c0_i32_0 = arith.constant 0 : i32
    %c0_i32_1 = arith.constant 0 : i32
    return %c0_i32, %c0_i32_0 : i32, i32
  }
  func.func @transform_7(%arg0: i32, %arg1: i32) -> (i32, i32) {
    %c0_i32 = arith.constant 0 : i32
    %c0_i32_0 = arith.constant 0 : i32
    return %arg0, %c0_i32 : i32, i32
  }
}

</mosaic_0001>

<bundles_post_ra>
// kernel: tpu_custom_call.1
= control target key start
LH: loop header
LB: loop body
LE: loop exit
PB: predicated region body
PF: predicated region fallthrough
CT: control target
= control target key end

     0   :  { %12 = vsyncpa [#allocation4], 0  ;;  %s1089_s0 = inlined_call_operand.vmem [shape: f32[16,32], index: 0, kind: input, shape index: {}]   ;;  %s1090_s1 = inlined_call_operand.vmem [shape: f32[32,64], index: 1, kind: input, shape index: {}]   ;;  %s1091_s2 = inlined_call_operand.vmem [shape: f32[1,64], index: 2, kind: input, shape index: {}]   ;;  %s1092_s3 = inlined_call_operand.vmem [shape: f32[64,32], index: 3, kind: input, shape index: {}]   ;;  %s1093_s4 = inlined_call_operand.vmem [shape: f32[1,32], index: 4, kind: input, shape index: {}]   ;;  %s1094_s5 = inlined_call_operand.vmem [shape: f32[1,32], index: 5, kind: input, shape index: {}]   ;;  %s1095_s6 = inlined_call_operand.vmem [shape: f32[1,32], index: 6, kind: input, shape index: {}]   ;;  %s1096_s7 = inlined_call_operand.hbm [shape: f32[16,32], index: 7, kind: output, shape index: {}]  }
   0x1   :  { %14 = vsyncpa [#allocation4 + $0x1], 0  ;;  %s937_s24 = smov 0   ;;  %s939_s25 = smov 0  }
   0x2   :  { %s941_s26 = smov 0   ;;  %s943_s27 = smov 0  }
   0x3   :  { %s945_s28 = smov 0   ;;  %s947_s29 = smov 0  }
   0x4 LB: > { %s691_s30 = sadd.s32 4294967295, %s892_s29   ;;  %s692_s8 = sadd.s32 4294967294, %s892_s29   ;;  %s892_s29 = sphi %s947_s29, %s20_s29   ;;  %s888_s28 = sphi %s945_s28, %s1103_s28   ;;  %s884_s27 = sphi %s943_s27, %s1102_s27   ;;  %s880_s26 = sphi %s941_s26, %s1101_s26   ;;  %s876_s25 = sphi %s939_s25, %s1100_s25   ;;  %s872_s24 = sphi %s937_s24, %s1099_s24  }
   0x5   : > { %s32_s9 = sadd.s32 1, %s888_s28  ;;  %s206_s10 = sadd.s32 1, %s880_s26 }
   0x6   : > { %p34_p0 = scmp.ge.s32.totalorder %s32_s9, 2  ;;  %p216_p1 = scmp.ne.s32.totalorder %s880_s26, %s876_s25 }
   0x7   : > { %p217_p2 = scmp.eq.s32.totalorder %s691_s30, 1  ;;  %p222_p3 = scmp.ne.s32.totalorder %s876_s25, %s872_s24 }
   0x8   : > { %s1105_s9 = smov (%p34_p0, %s32_s9), 0  ;;  %p223_p5 = scmp.eq.s32.totalorder %s692_s8, 1 }
   0x9   : > { %p977_p4 = por %p217_p2, %p216_p1  ;;  %s203_s12 = ssub.s32 %s888_s28, %s1105_s9 }
   0xa   : > { %p698_p6 = scmp.ge.s32.totalorder %s892_s29, 1  ;;  %p204_p7 = scmp.eq.s32.totalorder %s203_s12, 0 }
   0xb   : > { %p984_p8 = por %p223_p5, %p222_p3  ;;  %p279_p9 = scmp.lt.s32.totalorder %s892_s29, 3 }
   0xc   : > { %s990_s14 = scalar_select %p204_p7, %s880_s26, %s206_s10  }
   0xd   : > { %p280_p10 = pnand %p698_p6, %p279_p9 }
   0xe   : > { %p322_p11 = scmp.lt.s32.totalorder (!%p280_p10), %s884_s27, 1  ;;  %s708_s15 = sshll.u32 (!%p280_p10), %s884_s27, 7 }
   0xf   : > { %283 = sbr.rel (%p280_p10) target bundleno = 770 (0x302), region = 48  ;;  %s580_s20 = scalar_lea.hbm (!%p280_p10), %s1096_s7, %s708_s15 }
  0x10   : > { %s896_s8 = smov (!%p280_p10), [#allocation3]  }
  0x11   : > { %s820_s10 = sshll.u32 (!%p280_p10), %s896_s8, 4  ;;  %s821_s10 = int_to_ptr.vmem [resolvable:$false] %s820_s10 }
  0x14   : > { %v343_v0 = vld [vmem:[%s1090_s1 + $0x18] sm:$0xff]  ;;  %v894_v1 = vmov 0.0   ;;  %v342_v2 = vld [vmem:[%s1090_s1 + $0x10] sm:$0xff]  ;;  %vm895_vm0 = vmmov 0   ;;  %s323_s19 = scalar_select %p322_p11, %s884_s27, 1  ;;  %v341_v3 = vld [vmem:[%s1090_s1 + $0x8] sm:$0xff] }
  0x15   : > { %725 = vmatprep.subr.mxu0 %v894_v1  ;;  %733 = vmatprep.mubr.msk.f32.mxu0 %vm895_vm0, %v894_v1  ;;  %v340_v4 = vld [vmem:[%s1090_s1] sm:$0xff]  ;;  %vm351_vm1 = vcmask 261120   ;;  %v437_v6 = vld [vmem:[%s1092_s3 + $0x38] sm:$0xff]  ;;  %v436_v7 = vld [vmem:[%s1092_s3 + $0x30] sm:$0xff]  ;;  %vm438_vm2 = vcmask 523264   ;;  %s822_s27 = scalar_lea.vmem %s821_s10, 256 }
  0x16   : > { %726 = vmatpush3.msra.mxu0 %v343_v0  ;;  %736 = vmatprep.subr.mxu1 %v894_v1  ;;  %s700_s22 = sshll.u32 %s323_s19, 3  ;;  %v435_v8 = vld [vmem:[%s1092_s3 + $0x28] sm:$0xff]  ;;  %v434_v9 = vld [vmem:[%s1092_s3 + $0x20] sm:$0xff]  ;;  %v433_v10 = vld [vmem:[%s1092_s3 + $0x18] sm:$0xff] }
  0x17   : > { %727 = vmatprep.subr.mxu0 %v894_v1  ;;  %752 = vmatprep.mubr.msk.f32.mxu1 %vm895_vm0, %v894_v1  ;;  %s325_s12 = scalar_lea.vmem %s1089_s0, %s700_s22  ;;  %v432_v11 = vld [vmem:[%s1092_s3 + $0x10] sm:$0xff]  ;;  %v431_v12 = vld [vmem:[%s1092_s3 + $0x8] sm:$0xff]  ;;  %v430_v13 = vld [vmem:[%s1092_s3] sm:$0xff]  ;;  %s319_s22 = sand.u32 1, %s876_s25  }
  0x18   : > { %728 = vmatpush3.msra.mxu0 %v342_v2  ;;  %v339_v5 = vld [vmem:[%s325_s12] sm:$0xff]  ;;  %737 = vmatpush3.msra.mxu1 %v437_v6  ;;  %s699_s23 = sshll.u32 %s319_s22, 3  ;;  %s569_s21 = scalar_lea.sflag [#allocation4], %s319_s22 }
  0x19   : > { %729 = vmatprep.subr.mxu0 %v894_v1  ;;  %738 = vmatprep.subr.mxu1 %v894_v1  ;;  %v701_v14 = vld [vmem:[%s1091_s2] ss:$0 sm:$0xff]  ;;  %s321_s16 = scalar_lea.vmem [#allocation3], %s699_s23 }
  0x1a   : > { %730 = vmatpush3.msra.mxu0 %v341_v3  ;;  %739 = vmatpush3.msra.mxu1 %v436_v7  ;;  %v704_v25 = vld [vmem:[%s1093_s4] ss:$0 sm:$0xff]  ;;  %s582_s17 = sshll.u32 %s321_s16, 4  ;;  %s583_s17 = int_to_ptr.vmem [resolvable:$true] %s582_s17 }
  0x1b   : > { %731 = vmatprep.subr.mxu0 %v894_v1  ;;  %740 = vmatprep.subr.mxu1 %v894_v1  ;;  %v705_v39 = vld [vmem:[%s1094_s5] ss:$0 sm:$0xff]  ;;  %s816_s30 = scalar_lea.vmem %s583_s17, 128  ;;  %p823_p1 = scmp.lt.s32.totalorder %s583_s17, %s821_s10 }
  0x1c   : > { %732 = vmatpush3.msra.mxu0 %v340_v4  ;;  %741 = vmatpush3.msra.mxu1 %v435_v8  ;;  %v706_v41 = vld [vmem:[%s1095_s6] ss:$0 sm:$0xff]  ;;  %p817_p12 = scmp.ne.s32.totalorder %s583_s17, %s816_s30  ;;  %p824_p2 = scmp.lt.s32.totalorder %s822_s27, %s816_s30 }
  0x1d   : > { %734 = vmatmul.mubr.msk.f32.vlgmr.msra.gmra.mxu0 %vm351_vm1, %v339_v5  ;;  %742 = vmatprep.subr.mxu1 %v894_v1 }
  0x1e   : > { %743 = vmatpush3.msra.mxu1 %v434_v9  ;;  %p818_p13 = pnand %p817_p12, %p977_p4  ;;  %p825_p3 = por %p824_p2, %p823_p1 }
  0x1f   : > { %744 = vmatprep.subr.mxu1 %v894_v1 }
  0x20   : > { %745 = vmatpush3.msra.mxu1 %v433_v10  ;;  %p819_p0 = pneg %p818_p13 }
  0x21   : > { %746 = vmatprep.subr.mxu1 %v894_v1 }
  0x22   : > { %747 = vmatpush3.msra.mxu1 %v432_v11  ;;  %p826_p5 = pnand %p825_p3, %p819_p0 }
  0x23   : > { %748 = vmatprep.subr.mxu1 %v894_v1 }
  0x24   : > { %749 = vmatpush3.msra.mxu1 %v431_v12 }
  0x25   : > { %750 = vmatprep.subr.mxu1 %v894_v1 }
  0x26   : > { %751 = vmatpush3.msra.mxu1 %v430_v13 }
  0xdd   : > { %v421_v15 = vpop.f32.mrf.mxu0 }
  0xde   : > { %v422_v16 = vadd.f32 %v701_v14, %v421_v15 }
  0xdf   : > { %v735_v17 = vpop.f32.mrf.mxu0 }
  0xe0   : > { %v426_v18 = vmul.f32 0.70710677, %v422_v16  ;;  %v425_v20 = vmul.f32 0.5, %v422_v16 }
  0xe2   : > { %812 = verf.f32 %v426_v18 }
  0xef   : > { %v813_v19 = vpop.eup %812 }
  0xf0   : > { %v428_v21 = vadd.f32 1.0, %v813_v19 }
  0xf2   : > { %v429_v22 = vmul.f32 %v428_v21, %v425_v20 }
  0xf4   : > { %753 = vmatmul.mubr.msk.f32.vlgmr.msra.gmra.mxu1 %vm438_vm2, %v429_v22 }
 0x1b4   : > { %v508_v23 = vpop.f32.mrf.mxu1 }
 0x1b5   : > { %516 = vst.msk [vmem:[#allocation2] sm:$0xff] %vm351_vm1, %v508_v23 }
 0x1b6   : > { %v754_v24 = vpop.f32.mrf.mxu1 }
 0x1bc   : > { %v527_v26 = vld [vmem:[#allocation2] sm:$0xff] }
 0x1bd   : > { %v535_v27 = vadd.f32 %v704_v25, %v527_v26 }
 0x1bf   : > { %v536_v28 = vadd.f32 %v535_v27, %v339_v5 }
 0x1c1   : > { %v537_v29 = vsel %vm351_vm1, %v536_v28, 0.0 }
 0x1c2   : > { %538 = vadd.xlane.f32.xlu0 %v537_v29 }
 0x24b   : > { %v539_v30 = vpop.xlane.xlu0 %538 }
 0x24c   : > { %v541_v31 = vmul.f32 0.03125, %v539_v30 }
 0x24e   : > { %v542_v32 = vsub.f32 %v536_v28, %v541_v31 }
 0x250   : > { %v543_v33 = vmul.f32 %v542_v32, %v542_v32 }
 0x252   : > { %v544_v34 = vsel %vm351_vm1, %v543_v33, 0.0 }
 0x253   : > { %545 = vadd.xlane.f32.xlu0 %v544_v34 }
 0x2dc   : > { %v546_v35 = vpop.xlane.xlu0 %545 }
 0x2dd   : > { %v547_v36 = vmul.f32 0.03125, %v546_v35 }
 0x2df   : > { %v548_v37 = vadd.f32 1e-05, %v547_v36 }
 0x2e1   : > { %814 = vrsqrt.f32 %v548_v37 }
 0x2ee   : > { %v815_v38 = vpop.eup %814 }
 0x2ef   : > { %v550_v40 = vmul.f32 %v815_v38, %v542_v32 }
 0x2f1   : > { %v558_v42 = vmul.f32 %v705_v39, %v550_v40 }
 0x2f3   : > { %v566_v43 = vadd.f32 %v706_v41, %v558_v42 }
 0x2f5   : > { %567 = vst.msk [vmem:[%s321_s16] sm:$0xff] %vm351_vm1, %v566_v43 }
 0x2f6   : > { %829 = shalt.err (!%p826_p5)
}
 0x2f7   : > { %s830_s23 = scalar_lea.hbm %s580_s20, 128  ;;  %s834_s15 = scalar_lea.hbm %s1096_s7, 256 }
 0x2f8   : > { %p831_p6 = scmp.ne.s32.totalorder %s580_s20, %s830_s23  ;;  %p835_p10 = scmp.lt.s32.totalorder %s580_s20, %s1096_s7 }
 0x2f9   : > { %p836_p11 = scmp.lt.s32.totalorder %s834_s15, %s830_s23 }
 0x2fa   : > { %p832_p7 = pnand %p831_p6, %p977_p4 }
 0x2fb   : > { %p837_p12 = por %p836_p11, %p835_p10 }
 0x2fc   : > { %p833_p9 = pneg %p832_p7 }
 0x2fe   : > { %p838_p13 = pnand %p837_p12, %p833_p9 }
 0x300   : > { %841 = shalt.err (!%p838_p13)
}
 0x301   : > { %755 = dma.vmem_to_hbm [thread:$0]  (%p977_p4), %s583_s17, 128, %s580_s20, %s569_s21  }
 0x302 PF: > { %p761_p0 = scmp.ge.s32.totalorder %s892_s29, 2  ;;  %s594_s19 = sand.u32 1, %s872_s24  }
 0x303   : > { %s595_s30 = scalar_lea.sflag [#allocation4], %s594_s19 }
 0x304   : > { %p758_p1 = pnand %p761_p0, %p984_p8 }
 0x306   : > { %p759_p2 = pneg %p758_p1 }
 0x308   : > { %867 = dma.done.wait (%p759_p2), %s595_s30, 128  }
 0x309   : > { %869 = vsyncadd (%p759_p2), %s595_s30, 4294967168  ;;  %s20_s29 = sadd.s32 1, %s892_s29   ;;  %s1099_s24 = smov %s876_s25 }
 0x30a   : > { %p17_p3 = scmp.ge.s32.totalorder %s20_s29, 4   ;;  %s1100_s25 = smov %s880_s26 }
 0x30b   : > { %s1101_s26 = smov %s990_s14  ;;  %s1102_s27 = smov %s888_s28 }
 0x30c   : > { %s1103_s28 = smov %s1105_s9  ;;  %19 = sbr.rel (!%p17_p3) target bundleno = 4 (0x4), region = 104 }
 0x311   :  { %600 = vsyncpa [#allocation4], 1 }
 0x312   :  { %602 = vsyncpa [#allocation4 + $0x1], 1 }

</bundles_post_ra>
